<compile_context>
chip_gen: v7x
topology: tpu7x:2x2x1
jax: 0.10.0
libtpu: 0.0.40
codegen_flags: <defaults>
</compile_context>

<pallas_src>
import functools

import jax
import jax.numpy as jnp
from jax.experimental import pallas as pl
from jax.experimental.pallas import tpu as pltpu


def _pool_kernel(x_ref, s_ref, *, hw, tile):
    """Accumulate per-channel spatial sums in float32.

    x_ref: (C, T) tile of x in its native dtype.
    s_ref: (C, 1) float32 output, resident across the spatial grid axis.
    """
    @pl.when(pl.program_id(1) == 0)
    def _():
        s_ref[...] = jnp.zeros_like(s_ref)

    xv = x_ref[...].astype(jnp.float32)
    if hw % tile != 0:
        # Boundary tile holds unspecified values past hw; zero them so the sum
        # is exact.  One VPU compare+select per tile (memory-bound kernel).
        lane = jax.lax.broadcasted_iota(jnp.int32, xv.shape, dimension=1)
        mask = (pl.program_id(1) * tile + lane) < hw
        xv = jnp.where(mask, xv, 0.0)

    s_ref[...] += jnp.sum(xv, axis=-1, keepdims=True)


def _scale_kernel(x_ref, s_ref, o_ref):
    """out = x * scale  (scale = sigmoid(conv(mean(x))) precomputed per (b, c)).

    x_ref: (C, T) native dtype, s_ref: (C, 1) float32, o_ref: (C, T) native dtype.
    Boundary-tile garbage lanes are dropped by Pallas' masked output stores.
    """
    o_ref[...] = (x_ref[...].astype(jnp.float32) * s_ref[...]).astype(o_ref.dtype)


def _pick_hw_tile(hw, c, itemsize):
    """Lane-dense spatial tile: multiple of 128, capped so double-buffered
    in+out tiles stay well under default scoped VMEM (~2 MiB per tile)."""
    n128 = -(-hw // 128)
    budget = 2 * 1024 * 1024
    max_lanes = max(128, min(4096, budget // max(1, c * itemsize)))
    max_lanes = (max_lanes // 128) * 128
    return min(n128 * 128, max_lanes)


@jax.jit
def eca_forward(x_nchw, conv_w):
    """x_nchw: (B, C, H, W) float32/bfloat16; conv_w: (k,) Conv1d weight (squeezed)."""
    B, C, H, W = x_nchw.shape
    HW = H * W
    dtype = x_nchw.dtype
    x = x_nchw.reshape(B, C, HW)                            # free (contiguous)

    T = _pick_hw_tile(HW, C, jnp.dtype(dtype).itemsize)
    n_t = -(-HW // T)

    x_spec = pl.BlockSpec((pl.Squeezed(), C, T), lambda b, t: (b, 0, t))
    s_spec = pl.BlockSpec((pl.Squeezed(), C, 1), lambda b, t: (b, 0, 0))

    # Pass 1: per-(b, c) spatial sums, f32 accumulation.
    sums = pl.pallas_call(
        functools.partial(_pool_kernel, hw=HW, tile=T),
        out_shape=jax.ShapeDtypeStruct((B, C, 1), jnp.float32),
        grid=(B, n_t),
        in_specs=[x_spec],
        out_specs=s_spec,
        compiler_params=pltpu.CompilerParams(
            dimension_semantics=("parallel", "arbitrary")),
    )(x)

    # Tiny per-(B, C) glue in plain JAX: mean, k-tap zero-padded conv over the
    # channel axis (== Conv1d(1, 1, k, padding=(k-1)//2, bias=False)), sigmoid.
    mean = sums[:, :, 0] * (1.0 / HW)                       # (B, C), true HW
    k = conv_w.shape[0]
    pad = (k - 1) // 2
    yp = jnp.pad(mean, ((0, 0), (pad, pad)))
    conv = sum(conv_w[t].astype(jnp.float32) * yp[:, t:t + C] for t in range(k))
    scale = jax.nn.sigmoid(conv).reshape(B, C, 1)           # (B, C, 1) float32

    # Pass 2: lane-dense scaled output in the input's native dtype.
    out = pl.pallas_call(
        _scale_kernel,
        out_shape=jax.ShapeDtypeStruct((B, C, HW), dtype),
        grid=(B, n_t),
        in_specs=[x_spec, s_spec],
        out_specs=x_spec,
        compiler_params=pltpu.CompilerParams(
            dimension_semantics=("parallel", "parallel")),
    )(x, scale)

    return out.reshape(B, C, H, W)


def eca_ref(x, w):
    """Pure-JAX reference mirroring the PyTorch forward (f32)."""
    B, C, H, W = x.shape
    y = x.mean(axis=(2, 3))                                 # (B, C)
    k = w.shape[0]
    pad = (k - 1) // 2
    yp = jnp.pad(y, ((0, 0), (pad, pad)))
    conv = sum(w[t] * yp[:, t:t + C] for t in range(k))
    s = jax.nn.sigmoid(conv)[:, :, None, None]
    return x * s


if __name__ == "__main__":
    key = jax.random.PRNGKey(0)
    kx, kw, kx2, kx3 = jax.random.split(key, 4)

    k_size = 3
    # Conv1d(1, 1, 3, bias=False) weight, Kaiming-uniform-like deterministic init.
    bound = 1.0 / jnp.sqrt(jnp.float32(k_size))
    conv_w = jax.random.uniform(kw, (k_size,), jnp.float32, -bound, bound)

    # Test 1: f32, spatial size is already a multiple of the 128-lane tile.
    B, C, H, W = 2, 4, 16, 16
    x = jax.random.normal(kx, (B, C, H, W), dtype=jnp.float32)
    out = jax.block_until_ready(eca_forward(x, conv_w))
    ref = eca_ref(x, conv_w)
    assert out.shape == (B, C, H, W)
    assert jnp.allclose(out, ref, atol=1e-5, rtol=1e-5), "f32 mismatch vs reference"

    # Test 2: ragged spatial size (7*7 = 49 < 128 lanes), more channels.
    B2, C2, H2, W2 = 3, 16, 7, 7
    x2 = jax.random.normal(kx2, (B2, C2, H2, W2), dtype=jnp.float32)
    out2 = jax.block_until_ready(eca_forward(x2, conv_w))
    ref2 = eca_ref(x2, conv_w)
    assert jnp.allclose(out2, ref2, atol=1e-5, rtol=1e-5), "ragged-HW (<128) mismatch"

    # Test 3: ragged spatial size spanning multiple tiles (15*15 = 225 -> 2 tiles).
    B3, C3, H3, W3 = 2, 8, 15, 15
    x3 = jax.random.normal(kx3, (B3, C3, H3, W3), dtype=jnp.float32)
    out3 = jax.block_until_ready(eca_forward(x3, conv_w))
    ref3 = eca_ref(x3, conv_w)
    assert jnp.allclose(out3, ref3, atol=1e-5, rtol=1e-5), "ragged-HW (>128) mismatch"

    # Test 4: native bf16 I/O (f32 accumulation inside the kernels).
    xb = x.astype(jnp.bfloat16)
    outb = jax.block_until_ready(eca_forward(xb, conv_w))
    refb = eca_ref(xb.astype(jnp.float32), conv_w)
    assert outb.dtype == jnp.bfloat16
    assert jnp.allclose(outb.astype(jnp.float32), refb, atol=5e-2, rtol=5e-2), "bf16 mismatch"

    print("KERNEL_OK")
</pallas_src>

<mosaic_0001>
module attributes {stable_mosaic.version = 11 : i64} {
  func.func @_pool_kernel(%arg0: i32, %arg1: i32, %arg2: memref<1x4x256xf32, #tpu.memory_space<vmem>>, %arg3: memref<1x4x1xf32, #tpu.memory_space<vmem>>) attributes {dimension_semantics = [#tpu.dimension_semantics<parallel>, #tpu.dimension_semantics<arbitrary>], iteration_bounds = array<i64: 2, 1>, scalar_prefetch = 0 : i64, scratch_operands = 0 : i64, tpu.core_type = #tpu.core_type<tc>, window_params = [{transform_indices = @transform_0, window_bounds = array<i64: 1, 4, 256>}, {transform_indices = @transform_1, window_bounds = array<i64: 1, 4, 1>}]} {
    %c0_i32 = arith.constant 0 : i32
    %0 = arith.cmpi eq, %arg1, %c0_i32 : i32
    %1 = arith.extui %0 : i1 to i32
    %c0_i32_0 = arith.constant 0 : i32
    %2 = arith.cmpi ne, %1, %c0_i32_0 : i32
    scf.if %2 {
      %cst_9 = arith.constant 0.000000e+00 : f32
      %13 = vector.broadcast %cst_9 : f32 to vector<4x1xf32>
      %c0_10 = arith.constant 0 : index
      %c0_11 = arith.constant 0 : index
      %c0_12 = arith.constant 0 : index
      %14 = vector.load %arg3[%c0_10, %c0_11, %c0_12] : memref<1x4x1xf32, #tpu.memory_space<vmem>>, vector<1x4x1xf32>
      %15 = vector.shape_cast %14 : vector<1x4x1xf32> to vector<4x1xf32>
      %16 = vector.shape_cast %13 : vector<4x1xf32> to vector<1x4x1xf32>
      tpu.vector_store %arg3[%c0_10, %c0_11, %c0_12], %16 {strides = array<i32>} : memref<1x4x1xf32, #tpu.memory_space<vmem>>, vector<1x4x1xf32>,
    } else {
    }
    %c0 = arith.constant 0 : index
    %c0_1 = arith.constant 0 : index
    %c0_2 = arith.constant 0 : index
    %3 = vector.load %arg2[%c0, %c0_1, %c0_2] : memref<1x4x256xf32, #tpu.memory_space<vmem>>, vector<1x4x256xf32>
    %4 = vector.shape_cast %3 : vector<1x4x256xf32> to vector<4x256xf32>
    %c0_3 = arith.constant 0 : index
    %c0_4 = arith.constant 0 : index
    %c0_5 = arith.constant 0 : index
    %5 = vector.load %arg3[%c0_3, %c0_4, %c0_5] : memref<1x4x1xf32, #tpu.memory_space<vmem>>, vector<1x4x1xf32>
    %6 = vector.shape_cast %5 : vector<1x4x1xf32> to vector<4x1xf32>
    %cst = arith.constant dense<0.000000e+00> : vector<4xf32>
    %7 = vector.multi_reduction <add>, %4, %cst [1] : vector<4x256xf32> to vector<4xf32>
    %8 = vector.shape_cast %7 : vector<4xf32> to vector<4x1xf32>
    %9 = arith.addf %6, %8 : vector<4x1xf32>
    %c0_6 = arith.constant 0 : index
    %c0_7 = arith.constant 0 : index
    %c0_8 = arith.constant 0 : index
    %10 = vector.load %arg3[%c0_6, %c0_7, %c0_8] : memref<1x4x1xf32, #tpu.memory_space<vmem>>, vector<1x4x1xf32>
    %11 = vector.shape_cast %10 : vector<1x4x1xf32> to vector<4x1xf32>
    %12 = vector.shape_cast %9 : vector<4x1xf32> to vector<1x4x1xf32>
    tpu.vector_store %arg3[%c0_6, %c0_7, %c0_8], %12 {strides = array<i32>} : memref<1x4x1xf32, #tpu.memory_space<vmem>>, vector<1x4x1xf32>,
    return
  }
  func.func @transform_0(%arg0: i32, %arg1: i32) -> (i32, i32, i32) {
    %c0_i32 = arith.constant 0 : i32
    %c0_i32_0 = arith.constant 0 : i32
    return %arg0, %c0_i32, %arg1 : i32, i32, i32
  }
  func.func @transform_1(%arg0: i32, %arg1: i32) -> (i32, i32, i32) {
    %c0_i32 = arith.constant 0 : i32
    %c0_i32_0 = arith.constant 0 : i32
    %c0_i32_1 = arith.constant 0 : i32
    return %arg0, %c0_i32, %c0_i32_0 : i32, i32, i32
  }
}

module attributes {stable_mosaic.version = 11 : i64} {
  func.func @_scale_kernel(%arg0: i32, %arg1: i32, %arg2: memref<1x4x256xf32, #tpu.memory_space<vmem>>, %arg3: memref<1x4x1xf32, #tpu.memory_space<vmem>>, %arg4: memref<1x4x256xf32, #tpu.memory_space<vmem>>) attributes {dimension_semantics = [#tpu.dimension_semantics<parallel>, #tpu.dimension_semantics<parallel>], iteration_bounds = array<i64: 2, 1>, scalar_prefetch = 0 : i64, scratch_operands = 0 : i64, tpu.core_type = #tpu.core_type<tc>, window_params = [{transform_indices = @transform_0, window_bounds = array<i64: 1, 4, 256>}, {transform_indices = @transform_1, window_bounds = array<i64: 1, 4, 1>}, {transform_indices = @transform_2, window_bounds = array<i64: 1, 4, 256>}]} {
    %c0 = arith.constant 0 : index
    %c0_0 = arith.constant 0 : index
    %c0_1 = arith.constant 0 : index
    %0 = vector.load %arg2[%c0, %c0_0, %c0_1] : memref<1x4x256xf32, #tpu.memory_space<vmem>>, vector<1x4x256xf32>
    %1 = vector.shape_cast %0 : vector<1x4x256xf32> to vector<4x256xf32>
    %c0_2 = arith.constant 0 : index
    %c0_3 = arith.constant 0 : index
    %c0_4 = arith.constant 0 : index
    %2 = vector.load %arg3[%c0_2, %c0_3, %c0_4] : memref<1x4x1xf32, #tpu.memory_space<vmem>>, vector<1x4x1xf32>
    %3 = vector.shape_cast %2 : vector<1x4x1xf32> to vector<4x1xf32>
    %4 = vector.broadcast %3 : vector<4x1xf32> to vector<4x256xf32>
    %5 = arith.mulf %1, %4 : vector<4x256xf32>
    %c0_5 = arith.constant 0 : index
    %c0_6 = arith.constant 0 : index
    %c0_7 = arith.constant 0 : index
    %6 = vector.load %arg4[%c0_5, %c0_6, %c0_7] : memref<1x4x256xf32, #tpu.memory_space<vmem>>, vector<1x4x256xf32>
    %7 = vector.shape_cast %6 : vector<1x4x256xf32> to vector<4x256xf32>
    %8 = vector.shape_cast %5 : vector<4x256xf32> to vector<1x4x256xf32>
    tpu.vector_store %arg4[%c0_5, %c0_6, %c0_7], %8 {strides = array<i32>} : memref<1x4x256xf32, #tpu.memory_space<vmem>>, vector<1x4x256xf32>,
    return
  }
  func.func @transform_0(%arg0: i32, %arg1: i32) -> (i32, i32, i32) {
    %c0_i32 = arith.constant 0 : i32
    %c0_i32_0 = arith.constant 0 : i32
    return %arg0, %c0_i32, %arg1 : i32, i32, i32
  }
  func.func @transform_1(%arg0: i32, %arg1: i32) -> (i32, i32, i32) {
    %c0_i32 = arith.constant 0 : i32
    %c0_i32_0 = arith.constant 0 : i32
    %c0_i32_1 = arith.constant 0 : i32
    return %arg0, %c0_i32, %c0_i32_0 : i32, i32, i32
  }
  func.func @transform_2(%arg0: i32, %arg1: i32) -> (i32, i32, i32) {
    %c0_i32 = arith.constant 0 : i32
    %c0_i32_0 = arith.constant 0 : i32
    return %arg0, %c0_i32, %arg1 : i32, i32, i32
  }
}

</mosaic_0001>

<bundles_post_ra>
// kernel: eca_forward.2
= control target key start
LH: loop header
LB: loop body
LE: loop exit
PB: predicated region body
PF: predicated region fallthrough
CT: control target
= control target key end

     0   :  { %s302_s6 = smov 0   ;;  %s304_s7 = smov 0   ;;  %s334_s0 = inlined_call_operand.vmem [shape: f32[2,4,256], index: 0, kind: input, shape index: {}]   ;;  %s335_s1 = inlined_call_operand.vmem [shape: f32[2,4,1], index: 1, kind: output, shape index: {}]  }
   0x1   :  { %s306_s8 = smov 0  }
   0x2 LB: > { %s23_s9 = sadd.s32 1, %s285_s7  ;;  %p234_p0 = scmp.ge.s32.totalorder %s289_s8, 1  ;;  %s289_s8 = sphi %s306_s8, %s11_s8   ;;  %s285_s7 = sphi %s304_s7, %s337_s7   ;;  %s281_s6 = sphi %s302_s6, %s336_s6  }
   0x3   : > { %p25_p1 = scmp.ge.s32.totalorder %s23_s9, 2  ;;  %p106_p2 = scmp.lt.s32.totalorder %s289_s8, 3 }
   0x5   : > { %s339_s9 = smov (%p25_p1, %s23_s9), 0  ;;  %p107_p3 = pnand %p234_p0, %p106_p2 }
   0x6   : > { %p130_p4 = scmp.lt.s32.totalorder (!%p107_p3), %s281_s6, 1  ;;  %vm147_vm0 = vcmask (!%p107_p3), 3072   ;;  %vm154_vm1 = vcmask (!%p107_p3), 1043456   ;;  %v291_v1 = vmov (!%p107_p3), 0.0  }
   0x7   : > { %110 = sbr.rel (%p107_p3) target bundleno = 168 (0xa8), region = 24 }
   0xe   : > { %s341_s6 = smov (!%p130_p4, %s281_s6), 1 }
   0xf   : > { %s240_s10 = sshll.u32 %s341_s6, 3  ;;  %s237_s11 = sshll.u32 %s341_s6, 2 }
  0x10   : > { %s137_s14 = scalar_lea.vmem %s334_s0, %s240_s10  ;;  %s142_s17 = scalar_lea.vmem %s335_s1, %s237_s11 }
  0x11   : > { %v149_v0 = vld [vmem:[%s137_s14] sm:$0xff]  ;;  %148 = vst.msk [vmem:[%s142_s17] sm:$0xf] %vm147_vm0, %v291_v1 }
  0x12   : > { %v152_v2 = vcombine.high %v149_v0, %v149_v0  ;;  %v155_v3 = vsel %vm154_vm1, %v149_v0, 0.0 }
  0x14   : > { %v156_v4 = vsel %vm154_vm1, %v152_v2, 0.0 }
  0x15   : > { %v157_v5 = vadd.f32 %v156_v4, %v155_v3 }
  0x17   : > { %158 = vadd.xlane.f32.xlu0 %v157_v5 }
  0x18   : > { %v150_v6 = vld [vmem:[%s142_s17] sm:$0xf] }
  0xa4   : > { %v159_v7 = vpop.xlane.xlu0 %158 }
  0xa5   : > { %v160_v8 = vadd.f32 %v159_v7, %v150_v6 }
  0xa7   : > { %162 = vst.msk [vmem:[%s142_s17] sm:$0xf] %vm147_vm0, %v160_v8 }
  0xa8 PF: > { %s11_s8 = sadd.s32 1, %s289_s8   ;;  %s336_s6 = smov %s285_s7 }
  0xa9   : > { %p8_p5 = scmp.ge.s32.totalorder %s11_s8, 4   ;;  %s337_s7 = smov %s339_s9 }
  0xab   :  { %10 = sbr.rel (!%p8_p5) target bundleno = 2 (0x2), region = 58 }

// kernel: eca_forward.3
= control target key start
LH: loop header
LB: loop body
LE: loop exit
PB: predicated region body
PF: predicated region fallthrough
CT: control target
= control target key end

     0   :  { %s397_s9 = smov 0   ;;  %s399_s10 = smov 0   ;;  %s430_s0 = inlined_call_operand.vmem [shape: f32[2,4,256], index: 0, kind: input, shape index: {}]   ;;  %s431_s1 = inlined_call_operand.vmem [shape: f32[2,4,1], index: 1, kind: input, shape index: {}]   ;;  %s432_s2 = inlined_call_operand.vmem [shape: f32[2,4,256], index: 2, kind: output, shape index: {}]  }
   0x1   :  { %s401_s11 = smov 0  }
   0x2 LB: > { %s24_s12 = sadd.s32 1, %s374_s10  ;;  %p319_p0 = scmp.ge.s32.totalorder %s378_s11, 1  ;;  %s378_s11 = sphi %s401_s11, %s12_s11   ;;  %s374_s10 = sphi %s399_s10, %s434_s10   ;;  %s370_s9 = sphi %s397_s9, %s433_s9  }
   0x3   : > { %p26_p1 = scmp.ge.s32.totalorder %s24_s12, 2  ;;  %p142_p2 = scmp.lt.s32.totalorder %s378_s11, 3 }
   0x5   : > { %s436_s12 = smov (%p26_p1, %s24_s12), 0  ;;  %p143_p3 = pnand %p319_p0, %p142_p2 }
   0x6   : > { %p177_p4 = scmp.lt.s32.totalorder (!%p143_p3), %s370_s9, 1  ;;  %v380_v0 = vmov (!%p143_p3), 0   ;;  %v381_v2 = vmov (!%p143_p3), 839922192   ;;  %v209_v4 = vlaneseq (!%p143_p3) }
   0x7   : > { %146 = sbr.rel (%p143_p3) target bundleno = 151 (0x97), region = 28  ;;  %355 = vset.pattern.permute.xlu0 (!%p143_p3), %v380_v0  ;;  %v207_v3 = vunpack.c.l.s4 (!%p143_p3), %v381_v2 }
   0x8   : > { %v210_v6 = vshrl.u32 (!%p143_p3), %v209_v4, 7 }
   0x9   : > { %v208_v5 = vunpack.c.0.s8 (!%p143_p3), %v207_v3 }
   0xb   : > { %v211_v7 = vsub.s32 (!%p143_p3), %v208_v5, %v210_v6 }
   0xe   : > { %s438_s9 = smov (!%p177_p4, %s370_s9), 1 }
   0xf   : > { %s322_s13 = sshll.u32 %s438_s9, 2  ;;  %s327_s17 = sshll.u32 %s438_s9, 3 }
  0x10   : > { %s189_s16 = scalar_lea.vmem %s431_s1, %s322_s13  ;;  %s184_s20 = scalar_lea.vmem %s430_s0, %s327_s17 }
  0x11   : > { %v201_v1 = vld [vmem:[%s189_s16] sm:$0xf]  ;;  %s198_s23 = scalar_lea.vmem %s432_s2, %s327_s17 }
  0x12   : > { %204 = vperm.xlu0 %355, %v201_v1   ;;  %v200_v9 = vld [vmem:[%s184_s20] sm:$0xff] }
  0x91   : > { %v205_v8 = vpop.permute.xlu0 %204 }
  0x92   : > { %v212_v10 = vrot.slane %v205_v8, %v211_v7 }
  0x94   : > { %v214_v11 = vmul.f32 %v212_v10, %v200_v9 }
  0x96   : > { %215 = vst [vmem:[%s198_s23] sm:$0xff] %v214_v11 }
  0x97 PF: > { %s12_s11 = sadd.s32 1, %s378_s11   ;;  %s433_s9 = smov %s374_s10 }
  0x98   : > { %p9_p5 = scmp.ge.s32.totalorder %s12_s11, 4   ;;  %s434_s10 = smov %s436_s12 }
  0x9a   :  { %11 = sbr.rel (!%p9_p5) target bundleno = 2 (0x2), region = 61 }

</bundles_post_ra>
